<compile_context>
chip_gen: v7x
topology: tpu7x:2x2x1
jax: 0.10.0
libtpu: 0.0.40
codegen_flags: <defaults>
</compile_context>

<pallas_src>
import jax
import jax.numpy as jnp
from jax.experimental import pallas as pl
from jax.experimental.pallas import tpu as pltpu


def _awl_kernel(packed_ref, out_ref):
    # packed_ref: (2, N) f32 in VMEM. Row 0 = task losses, row 1 = params.
    x = packed_ref[...]
    l = x[0:1, :]                      # (1, N)
    p = x[1:2, :]                      # (1, N)
    p2 = p * p
    # Exact reciprocal (approx=False keeps the 1e-6 tolerance); one EUP push,
    # remaining work on the VPU.
    inv_p2 = pl.reciprocal(p2)
    # log(1 + p2): keep the exact-lowering form (params init to 1, so log1p's
    # small-argument accuracy advantage is irrelevant here).
    term = 0.5 * inv_p2 * l + jnp.log(1.0 + p2)
    # Scalar result on the scalar/SMEM path.
    out_ref[0, 0] = jnp.sum(term)


def automatic_weighted_loss(losses, params):
    """losses: (N,) f32 vector of scalar task losses; params: (N,) f32."""
    n = losses.shape[0]
    # Single fused input: one DMA descriptor instead of two.
    packed = jnp.stack(
        [losses.astype(jnp.float32), params.astype(jnp.float32)], axis=0
    )  # (2, N)
    # TODO(synk): if N ever grows beyond ~128, repack to an (8k, 128)
    # lane/sublane-dense tile and keep the full-tile reduce.

    out = pl.pallas_call(
        _awl_kernel,
        out_shape=jax.ShapeDtypeStruct((1, 1), jnp.float32),
        in_specs=[
            pl.BlockSpec((2, n), lambda: (0, 0)),   # whole array, one VMEM block
        ],
        out_specs=pl.BlockSpec(memory_space=pltpu.SMEM),
        cost_estimate=pl.CostEstimate(
            flops=5 * n,
            transcendentals=2 * n,
            bytes_accessed=8 * n + 4,
        ),
    )(packed)
    return out[0, 0]


if __name__ == "__main__":
    num = 2
    # Deterministic parameter init, matching torch.ones(num) in __init__.
    params = jnp.ones((num,), dtype=jnp.float32)

    # Synthetic scalar task losses (e.g. two per-task losses already reduced).
    key = jax.random.PRNGKey(0)
    losses = jax.random.uniform(key, (num,), dtype=jnp.float32, minval=0.5, maxval=3.0)

    out = automatic_weighted_loss(losses, params)
    out = jax.block_until_ready(out)

    # Reference in plain JAX for sanity.
    p2 = params ** 2
    ref = jnp.sum(0.5 / p2 * losses + jnp.log(1.0 + p2))
    assert jnp.allclose(out, ref, rtol=1e-6, atol=1e-6), (out, ref)

    print("KERNEL_OK")
</pallas_src>

<mosaic_0001>
module attributes {stable_mosaic.version = 11 : i64} {
  func.func @_awl_kernel(%arg0: memref<2x2xf32, #tpu.memory_space<vmem>>, %arg1: memref<1x1xf32, #tpu.memory_space<smem>>) attributes {dimension_semantics = [], scalar_prefetch = 0 : i64, scratch_operands = 0 : i64, tpu.core_type = #tpu.core_type<tc>} {
    %c0 = arith.constant 0 : index
    %c0_0 = arith.constant 0 : index
    %0 = vector.load %arg0[%c0, %c0_0] : memref<2x2xf32, #tpu.memory_space<vmem>>, vector<2x2xf32>
    %1 = vector.extract_strided_slice %0 {offsets = [0, 0], sizes = [1, 2], strides = [1, 1]} : vector<2x2xf32> to vector<1x2xf32>
    %2 = vector.extract_strided_slice %0 {offsets = [1, 0], sizes = [1, 2], strides = [1, 1]} : vector<2x2xf32> to vector<1x2xf32>
    %3 = arith.mulf %2, %2 : vector<1x2xf32>
    %4 = tpu.reciprocal %3 : vector<1x2xf32> -> vector<1x2xf32>
    %cst = arith.constant 5.000000e-01 : f32
    %5 = vector.broadcast %cst : f32 to vector<1x2xf32>
    %6 = arith.mulf %5, %4 : vector<1x2xf32>
    %7 = arith.mulf %6, %1 : vector<1x2xf32>
    %cst_1 = arith.constant 1.000000e+00 : f32
    %8 = vector.broadcast %cst_1 : f32 to vector<1x2xf32>
    %9 = arith.addf %8, %3 : vector<1x2xf32>
    %10 = math.log %9 : vector<1x2xf32>
    %11 = arith.addf %7, %10 : vector<1x2xf32>
    %12 = vector.shape_cast %11 : vector<1x2xf32> to vector<1x1x2xf32>
    %cst_2 = arith.constant dense<0.000000e+00> : vector<1xf32>
    %13 = vector.multi_reduction <add>, %12, %cst_2 [1, 2] : vector<1x1x2xf32> to vector<1xf32>
    %14 = vector.shape_cast %13 : vector<1xf32> to vector<1x1x1xf32>
    %15 = vector.extract %14[0, 0, 0] : f32 from vector<1x1x1xf32>
    %c0_3 = arith.constant 0 : index
    %c0_4 = arith.constant 0 : index
    %16 = memref.load %arg1[%c0_3, %c0_4] : memref<1x1xf32, #tpu.memory_space<smem>>
    memref.store %15, %arg1[%c0_3, %c0_4] : memref<1x1xf32, #tpu.memory_space<smem>>
    return
  }
}

</mosaic_0001>

<bundles_post_ra>
// kernel: tpu_custom_call.1
= control target key start
LH: loop header
LB: loop body
LE: loop exit
PB: predicated region body
PF: predicated region fallthrough
CT: control target
= control target key end

     0   :  { %6 = vsyncpa [#allocation3], 0  ;;  %s143_s0 = inlined_call_operand.hbm [shape: f32[2,2], index: 0, kind: input, shape index: {}]   ;;  %s144_s1 = inlined_call_operand.hbm [shape: f32[1,1], index: 1, kind: output, shape index: {}]  }
   0x1   :  { %7 = vsyncpa [#allocation4], 0  ;;  %s107_s6 = smov [#allocation2]   ;;  %s71_s10 = scalar_lea.hbm %s143_s0, 32 }
   0x2   :  { %s14_s7 = sshll.u32 %s107_s6, 4  ;;  %p72_p0 = scmp.ne.s32.totalorder %s143_s0, %s71_s10  ;;  %s15_s7 = int_to_ptr.vmem [resolvable:$true] %s14_s7 }
   0x3   :  { %p75_p1 = scmp.lt.u32.totalorder %s71_s10, %s143_s0 }
   0x5   :  { %p77_p2 = pnand %p75_p1, %p72_p0 }
   0x7   :  { %80 = shalt.err (!%p77_p2)
}
   0x8   :  { %s81_s15 = scalar_lea.vmem %s15_s7, 32  ;;  %p86_p4 = scmp.lt.s32.totalorder %s15_s7, %s15_s7 }
   0x9   :  { %p82_p3 = scmp.ne.s32.totalorder %s15_s7, %s81_s15  ;;  %p87_p5 = scmp.lt.s32.totalorder %s81_s15, %s81_s15 }
   0xb   :  { %p88_p6 = por %p87_p5, %p86_p4 }
   0xd   :  { %p89_p7 = pnand %p88_p6, %p82_p3 }
   0xf   :  { %92 = shalt.err (!%p89_p7)
}
  0x10   :  { %17 = dma.hbm_to_vmem [thread:$0]  %s143_s0, 32, %s15_s7, [#allocation3]  }
  0x11   :  { %103 = dma.done.wait [#allocation3], 32  }
  0x12   :  { %104 = vsyncadd [#allocation3], 4294967264  ;;  %v21_v0 = vld [vmem:[#allocation2] sm:$0x3]  ;;  %vm36_vm0 = vcmask 8192   ;;  %s93_s20 = scalar_lea.hbm %s144_s1, 16 }
  0x13   :  { %v22_v1 = vmul.f32 %v21_v0, %v21_v0  ;;  %v26_v3 = vrot.slane %v21_v0, 7  ;;  %p94_p8 = scmp.ne.s32.totalorder %s144_s1, %s93_s20  ;;  %p97_p9 = scmp.lt.u32.totalorder %s93_s20, %s144_s1 }
  0x15   :  { %67 = vrcp.f32 %v22_v1  ;;  %v29_v2 = vadd.f32 1.0, %v22_v1  ;;  %p99_p10 = pnand %p97_p9, %p94_p8 }
  0x17   :  { %69 = vlog2.f32 %v29_v2 }
  0x1f   :  { %v68_v4 = vpop.eup %67 }
  0x20   :  { %v24_v5 = vmul.f32 0.5, %v68_v4 }
  0x21   :  { %v70_v6 = vpop.eup %69 }
  0x22   :  { %v28_v7 = vmul.f32 %v26_v3, %v24_v5  ;;  %v31_v8 = vmul.f32 0.6931472, %v70_v6 }
  0x24   :  { %v32_v9 = vadd.f32 %v31_v8, %v28_v7 }
  0x26   :  { %v34_v10 = vrot.slane %v32_v9, 1 }
  0x28   :  { %v37_v11 = vsel %vm36_vm0, %v34_v10, 0.0 }
  0x29   :  { %38 = vadd.xlane.f32.xlu0 %v37_v11 }
  0xb6   :  { %v39_v12 = vpop.xlane.xlu0 %38 }
  0xb7   :  { %v40_v13 = vrot.slane %v39_v12, 4 }
  0xb9   :  { %v41_v14 = vadd.f32 %v40_v13, %v39_v12 }
  0xbb   :  { %v42_v15 = vrot.slane %v41_v14, 2 }
  0xbd   :  { %v43_v16 = vadd.f32 %v42_v15, %v41_v14 }
  0xbf   :  { %v44_v17 = vrot.slane %v43_v16, 1 }
  0xc1   :  { %v45_v18 = vadd.f32 %v44_v17, %v43_v16 }
  0xc3   :  { %63 = vpush %v45_v18 }
  0xf4   :  { %s64_s0 = spop %63 }
  0xf5   :  { %48 = sst [smem:[#allocation5]] %s64_s0 }
  0xf6   :  { %102 = shalt.err (!%p99_p10)
}
  0xf7   :  { %s108_s25 = smov [#allocation5]  }
  0xf8   :  { %56 = dma.smem_to_hbm %s108_s25, 16, %s144_s1, [#allocation4]  }
  0xf9   :  { %105 = dma.done.wait [#allocation4], 16  }
  0xfa   :  { %106 = vsyncadd [#allocation4], 4294967280 }
  0xfb   :  { %60 = sfence }
  0xfc   :  { %61 = vsyncpa [#allocation3], 1 }
  0xfd   :  { %62 = vsyncpa [#allocation4], 1 }

</bundles_post_ra>
